<compile_context>
chip_gen: v7x
topology: tpu7x:2x2x1
jax: 0.10.0
libtpu: 0.0.40
codegen_flags: <defaults>
</compile_context>

<pallas_src>
import functools

import jax
import jax.numpy as jnp
import numpy as np
from jax.experimental import pallas as pl
from jax.experimental.pallas import tpu as pltpu

_MIB = 1 << 20


def _sigmoid(x):
    return 1.0 / (1.0 + jnp.exp(-x))


def _tpu_memory_plan():
    """Generation-aware budgets.

    Returns (single_pass_budget, vmem_limit_cap, max_fallback_tile_bytes,
    cores_per_chip).  128-MiB-VMEM parts (v4/v5e/v6e, 1 TC/chip) get large
    budgets; 64-MiB parts (v7x, 2 TC/chip sharing HBM BW) stay conservative.
    """
    vmem = 0
    try:
        info = pltpu.get_tpu_info()
        for attr in ("vmem_capacity_bytes", "vmem_size_bytes", "vmem_bytes"):
            v = getattr(info, attr, None)
            if v:
                vmem = int(v)
                break
    except Exception:
        vmem = 0
    kind = ""
    try:
        kind = jax.devices()[0].device_kind.lower()
    except Exception:
        kind = ""
    if vmem == 0:
        # Unknown: only trust a non-v7x device_kind; otherwise stay conservative.
        vmem = 128 * _MIB if (kind and "7" not in kind) else 64 * _MIB

    if vmem >= 100 * _MIB:          # v5e / v6e: 128 MiB VMEM, 1 TensorCore
        return 100 * _MIB, 110 * _MIB, 14 * _MIB, 1
    # v7x-like: 64 MiB VMEM per TC, 2 TensorCores share chip HBM bandwidth.
    return 40 * _MIB, 50 * _MIB, 8 * _MIB, 2


def _plan_hw_tiling(hw, c, itemsize, max_tile_bytes):
    """Pick a lane-dense (multiple-of-128) HW tile and the padded HW it divides."""
    lane_cap = max(128, (max_tile_bytes // max(1, c * itemsize)) // 128 * 128)
    hw128 = ((hw + 127) // 128) * 128          # pad ragged HW to the lane width
    if hw128 <= lane_cap:
        return hw128, hw128                    # single tile covers the (padded) HW
    best = None
    for t in range(128, lane_cap + 1, 128):    # largest 128-multiple divisor
        if hw128 % t == 0:
            best = t
    if best is not None:
        return best, hw128
    # No clean divisor fits the cap: use the cap and pad HW up to a multiple of
    # it.  Padded columns are zero -> spatial sums unchanged; sliced off after
    # the gate sweep.
    return lane_cap, ((hw128 + lane_cap - 1) // lane_cap) * lane_cap


# ----------------------------- single-pass kernel -----------------------------
def _se_single_pass_kernel(x_ref, w1_ref, b1_ref, w2_ref, b2_ref, o_ref, *, inv_hw):
    # x_ref / o_ref: [1, C, HW] -- the whole sample slab, resident in VMEM.
    # Spatial mean accumulated in f32 directly off the ref (no materialized
    # f32 copy of the slab, and the big slab value is not kept live across the
    # FC sequence -> low vreg pressure / no spill pressure on the VMEM gate).
    mean = jnp.sum(x_ref[...], axis=2, keepdims=True, dtype=jnp.float32)[0] * inv_hw  # [C,1]
    # Excitation MLP on the tiny [C] vector.  Column layout keeps C on sublanes
    # end-to-end, so no lane<->sublane relayout is needed anywhere.
    # NOTE: these [Ch,C]x[C,1] matvecs use a sliver of the MXU and sit between
    # reduce and gate; they stay hidden under the slab DMA for realistic C/HW.
    h = jnp.dot(w1_ref[...], mean, preferred_element_type=jnp.float32) + b1_ref[...]
    h = jnp.maximum(h, 0.0)                                                    # ReLU
    e = jnp.dot(w2_ref[...], h, preferred_element_type=jnp.float32) + b2_ref[...]
    scale = _sigmoid(e).astype(o_ref.dtype)                                    # [C, 1]
    # Fresh ref read for the gate; per-channel scale broadcast once per sample.
    o_ref[...] = x_ref[...] * scale[None, :, :]


# ----------------------------- two-pass fallback ------------------------------
def _squeeze_partial_kernel(x_ref, psum_ref):
    # Per-(sample, hw-tile) partial spatial sum -> no cross-step accumulator, so
    # BOTH grid axes are 'parallel' (v7x megacore splits the sweep even at N=1).
    s = jnp.sum(x_ref[...], axis=2, keepdims=True, dtype=jnp.float32)  # [1, C, 1]
    psum_ref[...] = s[:, None, :, :]                                   # [1, 1, C, 1]


def _gate_kernel(scale_ref, x_ref, o_ref):
    # scale_ref: [1, C, 1] (already in x dtype); x_ref / o_ref: [1, C, hw_tile].
    o_ref[...] = x_ref[...] * scale_ref[...]


# ---------------------------------- wrapper -----------------------------------
def squeeze_and_excitation(x, w_reduce, b_reduce, w_expand, b_expand,
                           *, force_two_pass=False, hw_tile=None, donate_x=False):
    """Pallas TPU Squeeze-and-Excitation forward (active_fn = ReLU).

    x: [N, C, H, W]; w_reduce: [Ch, C]; b_reduce: [Ch]; w_expand: [C, Ch];
    b_expand: [C]  (the 1x1-conv weights with the trailing 1x1 dims squeezed).
    Set donate_x=True when the caller donates x (enables input/output aliasing).
    """
    n, c, h, w = x.shape
    hw = h * w
    ch = w_reduce.shape[0]
    inv_hw = 1.0 / float(hw)

    single_budget, vmem_cap, max_tile_bytes, cores_per_chip = _tpu_memory_plan()

    x3 = x.reshape(n, c, hw)  # channels on sublanes, H*W on the 128-lane axis
    # TODO(synk): for late SE blocks with tiny HW (<128) and C >= 128, a
    # channels-on-lanes variant would keep stores lane-dense; not needed here.

    w1 = w_reduce.astype(jnp.float32)                 # [Ch, C]
    b1 = b_reduce.astype(jnp.float32).reshape(ch, 1)  # [Ch, 1]
    w2 = w_expand.astype(jnp.float32)                 # [C, Ch]
    b2 = b_expand.astype(jnp.float32).reshape(c, 1)   # [C, 1]

    itemsize = x.dtype.itemsize
    slab_bytes = c * hw * itemsize
    param_bytes = 4 * (w1.size + b1.size + w2.size + b2.size)
    # in + out slabs, each double-buffered by the Pallas pipeline, + params +
    # margin for Mosaic internal scratch / f32 reduce temporaries.
    need_bytes = 4 * slab_bytes + param_bytes + 2 * _MIB

    use_single = (not force_two_pass) and need_bytes <= single_budget
    # v7x: a batch-1 single-pass grid=(1,) leaves one of the two TensorCores
    # (which share chip HBM bandwidth) idle.  The two-pass sweeps parallelize
    # over HW tiles, so they win despite 3x traffic once the slab is non-trivial.
    if use_single and cores_per_chip > 1 and n == 1 and slab_bytes >= 2 * _MIB:
        use_single = False

    if use_single:
        # ---- single pass: x crosses HBM once (read) + once (write) ----
        vmem_limit = int(min(max(need_bytes + 8 * _MIB, 32 * _MIB), vmem_cap))
        out3 = pl.pallas_call(
            functools.partial(_se_single_pass_kernel, inv_hw=inv_hw),
            out_shape=jax.ShapeDtypeStruct((n, c, hw), x.dtype),
            grid=(n,),
            in_specs=[
                pl.BlockSpec((1, c, hw), lambda i: (i, 0, 0)),
                pl.BlockSpec((ch, c), lambda i: (0, 0)),
                pl.BlockSpec((ch, 1), lambda i: (0, 0)),
                pl.BlockSpec((c, ch), lambda i: (0, 0)),
                pl.BlockSpec((c, 1), lambda i: (0, 0)),
            ],
            out_specs=pl.BlockSpec((1, c, hw), lambda i: (i, 0, 0)),
            compiler_params=pltpu.CompilerParams(
                dimension_semantics=("parallel",),
                vmem_limit_bytes=vmem_limit,
            ),
            input_output_aliases=({0: 0} if donate_x else {}),
        )(x3, w1, b1, w2, b2)
        return out3.reshape(n, c, h, w)

    # ---- two-pass fallback: squeeze sweep -> batched FCs in XLA -> gate sweep ----
    if hw_tile is None:
        hw_tile, hw_pad = _plan_hw_tiling(hw, c, itemsize, max_tile_bytes)
    else:
        assert hw_tile % 128 == 0 or hw_tile == hw, "hw_tile must be lane-aligned"
        hw_pad = ((hw + hw_tile - 1) // hw_tile) * hw_tile
    n_tiles = hw_pad // hw_tile

    # Zero-pad the ragged lane tail (zeros don't contribute to the spatial sum).
    x3p = x3 if hw_pad == hw else jnp.pad(x3, ((0, 0), (0, 0), (0, hw_pad - hw)))

    tile_bytes = c * hw_tile * itemsize
    vmem_limit = int(min(max(4 * tile_bytes + 8 * _MIB, 32 * _MIB), vmem_cap))

    # Pass 1: per-tile partial spatial sums; both grid axes 'parallel'.
    partials = pl.pallas_call(
        _squeeze_partial_kernel,
        out_shape=jax.ShapeDtypeStruct((n, n_tiles, c, 1), jnp.float32),
        grid=(n, n_tiles),
        in_specs=[pl.BlockSpec((1, c, hw_tile), lambda i, t: (i, 0, t))],
        out_specs=pl.BlockSpec((1, 1, c, 1), lambda i, t: (i, t, 0, 0)),
        compiler_params=pltpu.CompilerParams(
            dimension_semantics=("parallel", "parallel"),
            vmem_limit_bytes=vmem_limit,
        ),
    )(x3p)

    # Tiny excitation MLP, batched over N (plain XLA; FLOPs are negligible).
    means = jnp.sum(partials[..., 0], axis=1) * inv_hw           # [N, C]  f32
    hmid = jnp.maximum(means @ w1.T + b1[:, 0], 0.0)             # [N, Ch]
    excite = hmid @ w2.T + b2[:, 0]                              # [N, C]
    scale = _sigmoid(excite).astype(x.dtype).reshape(n, c, 1)    # [N, C, 1]

    # Pass 2: gate sweep (lane-dense tiles, both axes 'parallel').
    out3p = pl.pallas_call(
        _gate_kernel,
        out_shape=jax.ShapeDtypeStruct((n, c, hw_pad), x.dtype),
        grid=(n, n_tiles),
        in_specs=[
            pl.BlockSpec((1, c, 1), lambda i, t: (i, 0, 0)),
            pl.BlockSpec((1, c, hw_tile), lambda i, t: (i, 0, t)),
        ],
        out_specs=pl.BlockSpec((1, c, hw_tile), lambda i, t: (i, 0, t)),
        compiler_params=pltpu.CompilerParams(
            dimension_semantics=("parallel", "parallel"),
            vmem_limit_bytes=vmem_limit,
        ),
        input_output_aliases=({1: 0} if (donate_x and hw_pad == hw) else {}),
    )(scale, x3p)
    out3 = out3p[:, :, :hw] if hw_pad != hw else out3p
    return out3.reshape(n, c, h, w)


# --------------------------------- reference ----------------------------------
def se_reference(x, w_reduce, b_reduce, w_expand, b_expand):
    xf = x.astype(jnp.float32)
    m = jnp.mean(xf, axis=(2, 3))                                        # [N, C]
    hmid = jnp.maximum(m @ w_reduce.astype(jnp.float32).T
                       + b_reduce.astype(jnp.float32), 0.0)              # [N, Ch]
    e = hmid @ w_expand.astype(jnp.float32).T + b_expand.astype(jnp.float32)
    s = _sigmoid(e).astype(x.dtype)
    return x * s[:, :, None, None]


if __name__ == "__main__":
    key = jax.random.PRNGKey(0)
    n, c, h, w, ch = 2, 4, 16, 16, 8
    k1, k2, k3, k4, k5 = jax.random.split(key, 5)
    x = jax.random.normal(k1, (n, c, h, w), dtype=jnp.float32)
    w_reduce = 0.1 * jax.random.normal(k2, (ch, c), dtype=jnp.float32)
    b_reduce = 0.1 * jax.random.normal(k3, (ch,), dtype=jnp.float32)
    w_expand = 0.1 * jax.random.normal(k4, (c, ch), dtype=jnp.float32)
    b_expand = 0.1 * jax.random.normal(k5, (c,), dtype=jnp.float32)

    ref = se_reference(x, w_reduce, b_reduce, w_expand, b_expand)

    # 1) Primary single-pass path.
    out1 = squeeze_and_excitation(x, w_reduce, b_reduce, w_expand, b_expand)
    jax.block_until_ready(out1)
    np.testing.assert_allclose(np.asarray(out1), np.asarray(ref), rtol=2e-5, atol=2e-5)

    # 2) Two-pass fallback (forced, 2 HW tiles -> exercises the partial-sum reduce).
    out2 = squeeze_and_excitation(x, w_reduce, b_reduce, w_expand, b_expand,
                                  force_two_pass=True, hw_tile=128)
    jax.block_until_ready(out2)
    np.testing.assert_allclose(np.asarray(out2), np.asarray(ref), rtol=2e-5, atol=2e-5)

    # 3) Ragged H*W (10x10 = 100 lanes) -> exercises the zero-padded lane tail.
    xr = jax.random.normal(k1, (2, 8, 10, 10), dtype=jnp.float32)
    wr1 = 0.1 * jax.random.normal(k2, (4, 8), dtype=jnp.float32)
    br1 = 0.1 * jax.random.normal(k3, (4,), dtype=jnp.float32)
    wr2 = 0.1 * jax.random.normal(k4, (8, 4), dtype=jnp.float32)
    br2 = 0.1 * jax.random.normal(k5, (8,), dtype=jnp.float32)
    ref_r = se_reference(xr, wr1, br1, wr2, br2)
    out3 = squeeze_and_excitation(xr, wr1, br1, wr2, br2, force_two_pass=True)
    jax.block_until_ready(out3)
    np.testing.assert_allclose(np.asarray(out3), np.asarray(ref_r), rtol=2e-5, atol=2e-5)

    # 4) Donated-input single-pass path (input_output_aliases) under jit.
    se_donate = jax.jit(
        functools.partial(squeeze_and_excitation, donate_x=True),
        donate_argnums=(0,),
    )
    x_don = x + 0.0
    out4 = se_donate(x_don, w_reduce, b_reduce, w_expand, b_expand)
    jax.block_until_ready(out4)
    np.testing.assert_allclose(np.asarray(out4), np.asarray(ref), rtol=2e-5, atol=2e-5)

    print("KERNEL_OK")
</pallas_src>

<mosaic_0001>
module attributes {stable_mosaic.version = 11 : i64} {
  func.func @_se_single_pass_kernel(%arg0: i32, %arg1: memref<1x4x256xf32, #tpu.memory_space<vmem>>, %arg2: memref<8x4xf32, #tpu.memory_space<vmem>>, %arg3: memref<8x1xf32, #tpu.memory_space<vmem>>, %arg4: memref<4x8xf32, #tpu.memory_space<vmem>>, %arg5: memref<4x1xf32, #tpu.memory_space<vmem>>, %arg6: memref<1x4x256xf32, #tpu.memory_space<vmem>>) attributes {dimension_semantics = [#tpu.dimension_semantics<parallel>], iteration_bounds = array<i64: 2>, scalar_prefetch = 0 : i64, scratch_operands = 0 : i64, tpu.core_type = #tpu.core_type<tc>, window_params = [{transform_indices = @transform_0, window_bounds = array<i64: 1, 4, 256>}, {pipeline_mode = #tpu.pipeline_mode<synchronous>, transform_indices = @transform_1, window_bounds = array<i64: 8, 4>}, {pipeline_mode = #tpu.pipeline_mode<synchronous>, transform_indices = @transform_2, window_bounds = array<i64: 8, 1>}, {pipeline_mode = #tpu.pipeline_mode<synchronous>, transform_indices = @transform_3, window_bounds = array<i64: 4, 8>}, {pipeline_mode = #tpu.pipeline_mode<synchronous>, transform_indices = @transform_4, window_bounds = array<i64: 4, 1>}, {transform_indices = @transform_5, window_bounds = array<i64: 1, 4, 256>}]} {
    %c0 = arith.constant 0 : index
    %c0_0 = arith.constant 0 : index
    %c0_1 = arith.constant 0 : index
    %0 = vector.load %arg1[%c0, %c0_0, %c0_1] : memref<1x4x256xf32, #tpu.memory_space<vmem>>, vector<1x4x256xf32>
    %cst = arith.constant dense<0.000000e+00> : vector<1x4xf32>
    %1 = vector.multi_reduction <add>, %0, %cst [2] : vector<1x4x256xf32> to vector<1x4xf32>
    %2 = vector.shape_cast %1 : vector<1x4xf32> to vector<1x4x1xf32>
    %3 = vector.shape_cast %2 : vector<1x4x1xf32> to vector<4x1xf32>
    %cst_2 = arith.constant 3.906250e-03 : f32
    %4 = vector.broadcast %cst_2 : f32 to vector<4x1xf32>
    %5 = arith.mulf %3, %4 : vector<4x1xf32>
    %c0_3 = arith.constant 0 : index
    %c0_4 = arith.constant 0 : index
    %6 = vector.load %arg2[%c0_3, %c0_4] : memref<8x4xf32, #tpu.memory_space<vmem>>, vector<8x4xf32>
    %cst_5 = arith.constant dense<0.000000e+00> : vector<8x1xf32>
    %7 = tpu.matmul %6, %5, %cst_5 {dimension_numbers = #tpu.dot_dimension_numbers<[1], [0], [0], [1], [0, 0, 1, 1], [], []>} : vector<8x4xf32>, vector<4x1xf32>, vector<8x1xf32> -> vector<8x1xf32>
    %c0_6 = arith.constant 0 : index
    %c0_7 = arith.constant 0 : index
    %8 = vector.load %arg3[%c0_6, %c0_7] : memref<8x1xf32, #tpu.memory_space<vmem>>, vector<8x1xf32>
    %9 = arith.addf %7, %8 : vector<8x1xf32>
    %cst_8 = arith.constant 0.000000e+00 : f32
    %10 = vector.broadcast %cst_8 : f32 to vector<8x1xf32>
    %11 = arith.maximumf %9, %10 : vector<8x1xf32>
    %c0_9 = arith.constant 0 : index
    %c0_10 = arith.constant 0 : index
    %12 = vector.load %arg4[%c0_9, %c0_10] : memref<4x8xf32, #tpu.memory_space<vmem>>, vector<4x8xf32>
    %cst_11 = arith.constant dense<0.000000e+00> : vector<4x1xf32>
    %13 = tpu.matmul %12, %11, %cst_11 {dimension_numbers = #tpu.dot_dimension_numbers<[1], [0], [0], [1], [0, 0, 1, 1], [], []>} : vector<4x8xf32>, vector<8x1xf32>, vector<4x1xf32> -> vector<4x1xf32>
    %c0_12 = arith.constant 0 : index
    %c0_13 = arith.constant 0 : index
    %14 = vector.load %arg5[%c0_12, %c0_13] : memref<4x1xf32, #tpu.memory_space<vmem>>, vector<4x1xf32>
    %15 = arith.addf %13, %14 : vector<4x1xf32>
    %cst_14 = arith.constant 0.000000e+00 : f32
    %16 = vector.broadcast %cst_14 : f32 to vector<4x1xf32>
    %17 = arith.subf %16, %15 : vector<4x1xf32>
    %18 = math.exp %17 : vector<4x1xf32>
    %cst_15 = arith.constant 1.000000e+00 : f32
    %19 = vector.broadcast %cst_15 : f32 to vector<4x1xf32>
    %20 = arith.addf %19, %18 : vector<4x1xf32>
    %cst_16 = arith.constant 1.000000e+00 : f32
    %21 = vector.broadcast %cst_16 : f32 to vector<4x1xf32>
    %22 = arith.divf %21, %20 : vector<4x1xf32>
    %c0_17 = arith.constant 0 : index
    %c0_18 = arith.constant 0 : index
    %c0_19 = arith.constant 0 : index
    %23 = vector.load %arg1[%c0_17, %c0_18, %c0_19] : memref<1x4x256xf32, #tpu.memory_space<vmem>>, vector<1x4x256xf32>
    %24 = vector.shape_cast %22 : vector<4x1xf32> to vector<1x4x1xf32>
    %25 = vector.broadcast %24 : vector<1x4x1xf32> to vector<1x4x256xf32>
    %26 = arith.mulf %23, %25 : vector<1x4x256xf32>
    %c0_20 = arith.constant 0 : index
    %c0_21 = arith.constant 0 : index
    %c0_22 = arith.constant 0 : index
    %27 = vector.load %arg6[%c0_20, %c0_21, %c0_22] : memref<1x4x256xf32, #tpu.memory_space<vmem>>, vector<1x4x256xf32>
    tpu.vector_store %arg6[%c0_20, %c0_21, %c0_22], %26 {strides = array<i32>} : memref<1x4x256xf32, #tpu.memory_space<vmem>>, vector<1x4x256xf32>,
    return
  }
  func.func @transform_0(%arg0: i32) -> (i32, i32, i32) {
    %c0_i32 = arith.constant 0 : i32
    %c0_i32_0 = arith.constant 0 : i32
    %c0_i32_1 = arith.constant 0 : i32
    return %arg0, %c0_i32, %c0_i32_0 : i32, i32, i32
  }
  func.func @transform_1(%arg0: i32) -> (i32, i32) {
    %c0_i32 = arith.constant 0 : i32
    %c0_i32_0 = arith.constant 0 : i32
    %c0_i32_1 = arith.constant 0 : i32
    return %c0_i32, %c0_i32_0 : i32, i32
  }
  func.func @transform_2(%arg0: i32) -> (i32, i32) {
    %c0_i32 = arith.constant 0 : i32
    %c0_i32_0 = arith.constant 0 : i32
    %c0_i32_1 = arith.constant 0 : i32
    return %c0_i32, %c0_i32_0 : i32, i32
  }
  func.func @transform_3(%arg0: i32) -> (i32, i32) {
    %c0_i32 = arith.constant 0 : i32
    %c0_i32_0 = arith.constant 0 : i32
    %c0_i32_1 = arith.constant 0 : i32
    return %c0_i32, %c0_i32_0 : i32, i32
  }
  func.func @transform_4(%arg0: i32) -> (i32, i32) {
    %c0_i32 = arith.constant 0 : i32
    %c0_i32_0 = arith.constant 0 : i32
    %c0_i32_1 = arith.constant 0 : i32
    return %c0_i32, %c0_i32_0 : i32, i32
  }
  func.func @transform_5(%arg0: i32) -> (i32, i32, i32) {
    %c0_i32 = arith.constant 0 : i32
    %c0_i32_0 = arith.constant 0 : i32
    %c0_i32_1 = arith.constant 0 : i32
    return %arg0, %c0_i32, %c0_i32_0 : i32, i32, i32
  }
}

</mosaic_0001>

<bundles_post_ra>
// kernel: tpu_custom_call.1
= control target key start
LH: loop header
LB: loop body
LE: loop exit
PB: predicated region body
PF: predicated region fallthrough
CT: control target
= control target key end

     0   :  { %10 = vsyncpa [#allocation3], 0  ;;  %s778_s0 = inlined_call_operand.vmem [shape: f32[2,4,256], index: 0, kind: input, shape index: {}]   ;;  %s779_s1 = inlined_call_operand.vmem [shape: f32[8,4], index: 1, kind: input, shape index: {}]   ;;  %s780_s2 = inlined_call_operand.vmem [shape: f32[8,1], index: 2, kind: input, shape index: {}]   ;;  %s781_s3 = inlined_call_operand.vmem [shape: f32[4,8], index: 3, kind: input, shape index: {}]   ;;  %s782_s4 = inlined_call_operand.vmem [shape: f32[4,1], index: 4, kind: input, shape index: {}]   ;;  %s783_s5 = inlined_call_operand.hbm [shape: f32[2,4,256], index: 5, kind: output, shape index: {}]  }
   0x1   :  { %12 = vsyncpa [#allocation3 + $0x1], 0  ;;  %s663_s18 = smov 0   ;;  %s665_s19 = smov 0  }
   0x2   :  { %s667_s20 = smov 0   ;;  %s669_s21 = smov 0  }
   0x3 LB: > { %s684_s22 = sadd.s32 4294967295, %s626_s21   ;;  %s484_s23 = sadd.s32 4294967294, %s626_s21   ;;  %s626_s21 = sphi %s669_s21, %s789_s21   ;;  %s622_s20 = sphi %s667_s20, %s788_s20   ;;  %s618_s19 = sphi %s665_s19, %s787_s19   ;;  %s614_s18 = sphi %s663_s18, %s786_s18  }
   0x4   : > { %s688_s24 = sadd.s32 1, %s626_s21   ;;  %s135_s25 = sadd.s32 1, %s622_s20 }
   0x5   : > { %s132_s26 = ssub.s32 %s626_s21, %s688_s24  ;;  %p145_p0 = scmp.ne.s32.totalorder %s622_s20, %s618_s19 }
   0x6   : > { %p133_p1 = scmp.eq.s32.totalorder %s132_s26, 0  ;;  %p146_p2 = scmp.eq.s32.totalorder %s684_s22, 1 }
   0x7   : > { %p151_p3 = scmp.ne.s32.totalorder %s618_s19, %s614_s18  ;;  %p152_p4 = scmp.eq.s32.totalorder %s484_s23, 1 }
   0x8   : > { %s699_s27 = scalar_select %p133_p1, %s622_s20, %s135_s25  }
   0x9   : > { %p701_p5 = por %p146_p2, %p145_p0  ;;  %p705_p6 = por %p152_p4, %p151_p3 }
   0xa   : > { %p487_p7 = scmp.ge.s32.totalorder %s626_s21, 1  ;;  %p190_p8 = scmp.lt.s32.totalorder %s626_s21, 3 }
   0xc   : > { %p191_p9 = pnand %p487_p7, %p190_p8 }
   0xd   : > { %p218_p10 = scmp.lt.s32.totalorder (!%p191_p9), %s684_s22, 1  ;;  %vm227_vm0 = vcmask (!%p191_p9), 1043456   ;;  %v628_v5 = vmov (!%p191_p9), 0.0   ;;  %vm629_vm1 = vmmov (!%p191_p9), 0   ;;  %v234_v8 = vld [vmem:[%s779_s1] sm:$0xff] (!%p191_p9)  ;;  %vm236_vm2 = vcmask (!%p191_p9), 31744  }
   0xe   : > { %194 = sbr.rel (%p191_p9) target bundleno = 781 (0x30d), region = 40  ;;  %505 = vmatprep.subr.mxu0 (!%p191_p9), %v628_v5  ;;  %510 = vmatprep.subr.mxu1 (!%p191_p9), %v628_v5  ;;  %v235_v9 = vld [vmem:[%s780_s2] sm:$0xff] (!%p191_p9)  ;;  %vm316_vm3 = vcmask (!%p191_p9), 64512   ;;  %v630_v15 = vmov (!%p191_p9), 0   ;;  %v631_v25 = vmov (!%p191_p9), 839922192   ;;  %v403_v27 = vlaneseq (!%p191_p9) }
   0xf   : > { %507 = vmatprep.mubr.msk.f32.mxu0 (!%p191_p9), %vm629_vm1, %v628_v5  ;;  %512 = vmatprep.mubr.msk.f32.mxu1 (!%p191_p9), %vm629_vm1, %v628_v5  ;;  %v314_v14 = vld [vmem:[%s781_s3] sm:$0xf] (!%p191_p9)  ;;  %v401_v26 = vunpack.c.l.s4 (!%p191_p9), %v631_v25  ;;  %s215_s23 = sand.u32 (!%p191_p9), 1, %s618_s19   ;;  %s500_s26 = sshll.u32 (!%p191_p9), %s684_s22, 7 }
  0x10   : > { %558 = vset.pattern.permute.xlu0 (!%p191_p9), %v630_v15  ;;  %v315_v16 = vld [vmem:[%s782_s4] sm:$0xf] (!%p191_p9)  ;;  %v404_v29 = vshrl.u32 (!%p191_p9), %v403_v27, 7  ;;  %s488_s25 = sshll.u32 (!%p191_p9), %s215_s23, 3  ;;  %s411_s10 = scalar_lea.sflag (!%p191_p9), [#allocation3], %s215_s23 }
  0x11   : > { %v402_v28 = vunpack.c.0.s8 (!%p191_p9), %v401_v26 }
  0x13   : > { %v405_v30 = vsub.s32 (!%p191_p9), %v402_v28, %v404_v29 }
  0x15   : > { %s219_s30 = scalar_select %p218_p10, %s684_s22, 1 }
  0x16   : > { %s632_s22 = smov [#allocation2]  }
  0x17   : > { %s499_s6 = sshll.u32 %s219_s30, 3  ;;  %s217_s30 = scalar_lea.vmem [#allocation2], %s488_s25 }
  0x18   : > { %s222_s9 = scalar_lea.vmem %s778_s0, %s499_s6  ;;  %s425_s6 = sshll.u32 %s217_s30, 4  ;;  %s738_s6 = int_to_ptr.vmem [resolvable:$true] %s425_s6 }
  0x19   : > { %v223_v0 = vld [vmem:[%s222_s9] sm:$0xff]  ;;  %s736_s9 = scalar_lea.hbm %s783_s5, %s500_s26  ;;  %s564_s11 = scalar_lea.vmem %s738_s6, 128 }
  0x1a   : > { %v225_v1 = vcombine.high %v223_v0, %v223_v0  ;;  %v228_v2 = vsel %vm227_vm0, %v223_v0, 0.0  ;;  %p565_p11 = scmp.ne.s32.totalorder %s738_s6, %s564_s11  ;;  %s568_s12 = sshll.u32 %s632_s22, 4  ;;  %s569_s12 = int_to_ptr.vmem [resolvable:$false] %s568_s12 }
  0x1b   : > { %s570_s13 = scalar_lea.vmem %s569_s12, 256  ;;  %p571_p0 = scmp.lt.s32.totalorder %s738_s6, %s569_s12 }
  0x1c   : > { %v229_v3 = vsel %vm227_vm0, %v225_v1, 0.0  ;;  %p566_p12 = pnand %p565_p11, %p701_p5  ;;  %p572_p1 = scmp.lt.s32.totalorder %s570_s13, %s564_s11 }
  0x1d   : > { %v230_v4 = vadd.f32 %v229_v3, %v228_v2 }
  0x1e   : > { %p567_p13 = pneg %p566_p12  ;;  %p573_p2 = por %p572_p1, %p571_p0 }
  0x1f   : > { %231 = vadd.xlane.f32.xlu0 %v230_v4 }
  0x20   : > { %p574_p3 = pnand %p573_p2, %p567_p13 }
  0xac   : > { %v232_v6 = vpop.xlane.xlu0 %231 }
  0xad   : > { %v233_v7 = vmul.f32 0.00390625, %v232_v6 }
  0xaf   : > { %506 = vmatpush3.msk.msra.mxu0 %vm227_vm0, %v233_v7 }
  0xb0   : > { %508 = vmatmul.mubr.msk.f32.vlgmr.msra.gmra.mrb[0].mxu0 %vm236_vm2, %v234_v8 }
 0x183   : > { %v309_v10 = vpop.f32.mrb[0].mxu0 }
 0x184   : > { %v310_v11 = vadd.f32 %v309_v10, %v235_v9  ;;  %v509_v12 = vpop.f32.mrb[1].mxu0 }
 0x186   : > { %v313_v13 = vmax.f32 %v310_v11, 0.0 }
 0x188   : > { %511 = vmatpush3.msra.mxu1 %v313_v13 }
 0x189   : > { %513 = vmatmul.mubr.msk.f32.vlgmr.msra.gmra.mrb[0].mxu1 %vm316_vm3, %v314_v14 }
 0x25c   : > { %v386_v17 = vpop.f32.mrb[0].mxu1 }
 0x25d   : > { %v387_v18 = vadd.f32 %v386_v17, %v315_v16  ;;  %v514_v19 = vpop.f32.mrb[1].mxu1 }
 0x25f   : > { %v390_v20 = vsub.f32 0.0, %v387_v18 }
 0x261   : > { %v391_v21 = vmul.f32 1.442695, %v390_v20 }
 0x263   : > { %560 = vpow2.f32 %v391_v21 }
 0x26d   : > { %v561_v22 = vpop.eup %560 }
 0x26e   : > { %v393_v23 = vadd.f32 1.0, %v561_v22 }
 0x270   : > { %562 = vrcp.f32 %v393_v23 }
 0x27a   : > { %v563_v24 = vpop.eup %562 }
 0x27b   : > { %398 = vperm.xlu0 %558, %v563_v24  }
 0x2fa   : > { %v399_v31 = vpop.permute.xlu0 %398 }
 0x2fb   : > { %v406_v32 = vrot.slane %v399_v31, %v405_v30 }
 0x2fd   : > { %v408_v33 = vmul.f32 %v406_v32, %v223_v0 }
 0x2ff   : > { %409 = vst [vmem:[%s217_s30] sm:$0xff] %v408_v33 }
 0x300   : > { %577 = shalt.err (!%p574_p3)
}
 0x301   : > { %s578_s14 = scalar_lea.hbm %s736_s9, 128  ;;  %s582_s17 = scalar_lea.hbm %s783_s5, 256 }
 0x302   : > { %p579_p4 = scmp.ne.s32.totalorder %s736_s9, %s578_s14  ;;  %p583_p9 = scmp.lt.u32.totalorder %s736_s9, %s783_s5 }
 0x303   : > { %p584_p10 = scmp.lt.u32.totalorder %s582_s17, %s578_s14  ;;  %p586_p12 = scmp.lt.u32.totalorder %s578_s14, %s736_s9 }
 0x304   : > { %p580_p7 = pnand %p579_p4, %p701_p5 }
 0x305   : > { %p585_p11 = por %p584_p10, %p583_p9 }
 0x306   : > { %p581_p8 = pneg %p580_p7 }
 0x307   : > { %p587_p13 = por %p586_p12, %p585_p11 }
 0x309   : > { %p588_p0 = pnand %p587_p13, %p581_p8 }
 0x30b   : > { %591 = shalt.err (!%p588_p0)
}
 0x30c   : > { %515 = dma.vmem_to_hbm [thread:$0]  (%p701_p5), %s738_s6, 128, %s736_s9, %s411_s10  }
 0x30d PF: > { %p521_p1 = scmp.ge.s32.totalorder %s626_s21, 2  ;;  %s437_s26 = sand.u32 1, %s614_s18  }
 0x30e   : > { %s438_s30 = scalar_lea.sflag [#allocation3], %s437_s26 }
 0x30f   : > { %p518_p2 = pnand %p521_p1, %p705_p6 }
 0x311   : > { %609 = dma.done.wait (!%p518_p2), %s438_s30, 128  }
 0x312   : > { %611 = vsyncadd (!%p518_p2), %s438_s30, 4294967168  ;;  %p15_p3 = scmp.ge.s32.totalorder %s688_s24, 4   ;;  %s786_s18 = smov %s618_s19 }
 0x313   : > { %s787_s19 = smov %s622_s20  ;;  %s788_s20 = smov %s699_s27 }
 0x314   : > { %s789_s21 = smov %s688_s24  ;;  %17 = sbr.rel (!%p15_p3) target bundleno = 3 (0x3), region = 75 }
 0x31b   :  { %443 = vsyncpa [#allocation3], 1 }
 0x31c   :  { %445 = vsyncpa [#allocation3 + $0x1], 1 }

</bundles_post_ra>
